<compile_context>
chip_gen: v5e
topology: v5e:2x2
jax: 0.10.0
libtpu: 0.0.40
codegen_flags: <defaults>
</compile_context>

<pallas_src>
import functools

import jax
import jax.numpy as jnp
from jax.experimental import pallas as pl
from jax.experimental.pallas import tpu as pltpu


def _make_dice_kernel(c, tl, hw, softmax):
    """Kernel closure for static (C, tile-length, HW, softmax-flag)."""
    needs_mask = (hw % tl) != 0

    def kernel(score_ref, target_ref, out_ref, inter_acc, y_acc, z_acc):
        l = pl.program_id(1)                         # spatial tile index
        last_l = pl.num_programs(1) - 1

        @pl.when(l == 0)
        def _init():
            inter_acc[...] = jnp.zeros_like(inter_acc)
            y_acc[...] = jnp.zeros_like(y_acc)
            z_acc[...] = jnp.zeros_like(z_acc)

        score = score_ref[0].astype(jnp.float32)     # (C, TL), cast after DMA
        if softmax:
            # Fused, numerically-stable softmax over the class (sublane) axis.
            mx = jnp.max(score, axis=0, keepdims=True)
            e = jnp.exp(score - mx)
            score = e / jnp.sum(e, axis=0, keepdims=True)

        labels = target_ref[0].astype(jnp.int32)     # (1, TL)
        cls = jax.lax.broadcasted_iota(jnp.int32, (c, 1), 0)
        eq = labels == cls                           # broadcast -> (C, TL)

        def accumulate(s, m):
            inter_acc[...] += jnp.sum(s * m, axis=-1, keepdims=True)
            y_acc[...] += jnp.sum(m, axis=-1, keepdims=True)
            z_acc[...] += jnp.sum(s * s, axis=-1, keepdims=True)

        if needs_mask:
            @pl.when(l < last_l)
            def _full_tile():
                accumulate(score, eq.astype(jnp.float32))

            @pl.when(l == last_l)
            def _tail_tile():
                lane = jax.lax.broadcasted_iota(jnp.int32, (1, tl), 1)
                valid = (l * tl + lane) < hw         # (1, TL) lane mask
                s = jnp.where(valid, score, 0.0)
                m = jnp.logical_and(eq, valid).astype(jnp.float32)
                accumulate(s, m)
        else:
            accumulate(score, eq.astype(jnp.float32))

        @pl.when(l == last_l)
        def _finalize():
            # Lane-dense (C, 3*128) slab, written once per batch item:
            # lanes [0:128) intersect, [128:256) y_sum, [256:384) z_sum.
            out_ref[0, :, 0:128] = jnp.broadcast_to(inter_acc[...], (c, 128))
            out_ref[0, :, 128:256] = jnp.broadcast_to(y_acc[...], (c, 128))
            out_ref[0, :, 256:384] = jnp.broadcast_to(z_acc[...], (c, 128))

    return kernel


def _pick_tile(hw, c, itemsize, override=None):
    """Spatial tile length: whole HW when it fits, else a VMEM-budget tile."""
    if override is not None:
        tl = max(128, (int(override) // 128) * 128)
        return hw if hw <= tl else tl
    try:
        vmem_bytes = getattr(pltpu.get_tpu_info(), "vmem_capacity_bytes",
                             64 * 1024 * 1024)
    except Exception:  # conservative fallback if the query is unavailable
        vmem_bytes = 64 * 1024 * 1024
    # Keep the double-buffered score stream comfortably inside the scoped
    # VMEM default on every generation (v7x has only 64 MiB physical VMEM).
    budget = max(512 * 1024, vmem_bytes // 16)       # bytes per score buffer
    tl = budget // max(1, c * itemsize)
    tl = max(128, (tl // 128) * 128)
    tl = min(tl, 65536)
    return hw if hw <= tl else tl


@functools.partial(jax.jit,
                   static_argnames=("n_classes", "softmax", "tile_override"))
def dice_loss(inputs, target, n_classes, weight=None, softmax=False,
              tile_override=None):
    """JAX/Pallas equivalent of DiceLoss.forward.

    inputs : (N, C, H, W) float scores (any float dtype, cast in-kernel)
    target : (N, 1, H, W) integer-valued labels in [0, n_classes)
    """
    n, c, h, w = inputs.shape
    assert c == n_classes, "predict & target shape do not match"

    hw = h * w
    score = inputs.reshape(n, c, hw)                 # free reshape, native dtype
    labels = target.reshape(n, 1, hw)
    if not jnp.issubdtype(labels.dtype, jnp.integer):
        labels = labels.astype(jnp.int32)            # only widen when we must

    tl = _pick_tile(hw, c, score.dtype.itemsize, tile_override)
    num_l = pl.cdiv(hw, tl)

    kernel = _make_dice_kernel(c, tl, hw, softmax)

    partials = pl.pallas_call(
        kernel,
        out_shape=jax.ShapeDtypeStruct((n, c, 3 * 128), jnp.float32),
        grid_spec=pltpu.PrefetchScalarGridSpec(
            num_scalar_prefetch=0,
            grid=(n, num_l),
            in_specs=[
                pl.BlockSpec((1, c, tl), lambda i, j: (i, 0, j)),  # scores
                pl.BlockSpec((1, 1, tl), lambda i, j: (i, 0, j)),  # labels
            ],
            out_specs=pl.BlockSpec((1, c, 3 * 128), lambda i, j: (i, 0, 0)),
            scratch_shapes=[
                pltpu.VMEM((c, 1), jnp.float32),     # intersect per class
                pltpu.VMEM((c, 1), jnp.float32),     # y_sum per class
                pltpu.VMEM((c, 1), jnp.float32),     # z_sum per class
            ],
        ),
        compiler_params=pltpu.CompilerParams(
            # Batch items are independent (per-item partials) -> megacore
            # parallel on v7x; the spatial axis feeds the VMEM accumulators.
            dimension_semantics=("parallel", "arbitrary")),
    )(score, labels)

    intersect = jnp.sum(partials[:, :, 0], axis=0)   # (C,)
    y_sum = jnp.sum(partials[:, :, 128], axis=0)
    z_sum = jnp.sum(partials[:, :, 256], axis=0)

    smooth = jnp.float32(1e-10)
    dice = (2.0 * intersect + smooth) / (z_sum + y_sum + smooth)
    per_class_loss = 1.0 - dice                      # (C,)

    if weight is None:
        weight_arr = jnp.ones((n_classes,), dtype=jnp.float32)
    else:
        weight_arr = jnp.asarray(weight, dtype=jnp.float32)

    return jnp.sum(per_class_loss * weight_arr) / n_classes


def _reference_dice_loss(inputs, target, n_classes, weight=None, softmax=False):
    """Pure-JAX reference mirroring the PyTorch module."""
    if softmax:
        inputs = jax.nn.softmax(inputs, axis=1)
    tgt = target.astype(jnp.float32)
    one_hot = jnp.concatenate(
        [(tgt == i).astype(jnp.float32) for i in range(n_classes)], axis=1)
    if weight is None:
        weight = [1.0] * n_classes
    smooth = 1e-10
    loss = 0.0
    for i in range(n_classes):
        s = inputs[:, i].astype(jnp.float32)
        t = one_hot[:, i]
        intersect = jnp.sum(s * t)
        y_sum = jnp.sum(t * t)
        z_sum = jnp.sum(s * s)
        dice = 1.0 - (2.0 * intersect + smooth) / (z_sum + y_sum + smooth)
        loss = loss + dice * weight[i]
    return loss / n_classes


if __name__ == "__main__":
    key = jax.random.PRNGKey(0)
    k1, k2, k3, k4 = jax.random.split(key, 4)

    # Small shapes: (N, C, H, W) = (2, 4, 16, 16); whole HW fits in one tile.
    N, C, H, W = 2, 4, 16, 16
    inputs = jax.random.uniform(k1, (N, C, H, W), dtype=jnp.float32)
    target = jax.random.randint(k2, (N, 1, H, W), 0, C, dtype=jnp.int32)

    out = jax.block_until_ready(dice_loss(inputs, target, n_classes=C))
    ref = _reference_dice_loss(inputs, target, n_classes=C)
    assert jnp.allclose(out, ref, rtol=1e-4, atol=1e-5), (out, ref)

    # Fused-softmax path.
    out_sm = jax.block_until_ready(
        dice_loss(inputs, target, n_classes=C, softmax=True))
    ref_sm = _reference_dice_loss(inputs, target, n_classes=C, softmax=True)
    assert jnp.allclose(out_sm, ref_sm, rtol=1e-4, atol=1e-5), (out_sm, ref_sm)

    # Multi-tile + tail-mask + fused-softmax path with a forced small tile
    # (HW = 1600, TL = 512 -> 4 spatial tiles, 64-lane valid tail).
    N2, C2, H2, W2 = 2, 4, 40, 40
    inputs2 = jax.random.normal(k3, (N2, C2, H2, W2), dtype=jnp.float32)
    target2 = jax.random.randint(k4, (N2, 1, H2, W2), 0, C2, dtype=jnp.int32)
    out2 = jax.block_until_ready(
        dice_loss(inputs2, target2, n_classes=C2, softmax=True,
                  tile_override=512))
    ref2 = _reference_dice_loss(inputs2, target2, n_classes=C2, softmax=True)
    assert jnp.allclose(out2, ref2, rtol=1e-4, atol=1e-5), (out2, ref2)

    print("KERNEL_OK")
</pallas_src>

<mosaic_0001>
module attributes {stable_mosaic.version = 11 : i64} {
  func.func @kernel(%arg0: i32, %arg1: i32, %arg2: memref<1x4x256xf32, #tpu.memory_space<vmem>>, %arg3: memref<1x1x256xi32, #tpu.memory_space<vmem>>, %arg4: memref<1x4x384xf32, #tpu.memory_space<vmem>>, %arg5: memref<4x1xf32, #tpu.memory_space<vmem>>, %arg6: memref<4x1xf32, #tpu.memory_space<vmem>>, %arg7: memref<4x1xf32, #tpu.memory_space<vmem>>) attributes {dimension_semantics = [#tpu.dimension_semantics<parallel>, #tpu.dimension_semantics<arbitrary>], iteration_bounds = array<i64: 2, 1>, scalar_prefetch = 0 : i64, scratch_operands = 3 : i64, tpu.core_type = #tpu.core_type<tc>, window_params = [{transform_indices = @transform_0, window_bounds = array<i64: 1, 4, 256>}, {transform_indices = @transform_1, window_bounds = array<i64: 1, 1, 256>}, {transform_indices = @transform_2, window_bounds = array<i64: 1, 4, 384>}]} {
    %c0_i32 = arith.constant 0 : i32
    %0 = arith.cmpi eq, %arg1, %c0_i32 : i32
    %1 = arith.extui %0 : i1 to i32
    %c0_i32_0 = arith.constant 0 : i32
    %2 = arith.cmpi ne, %1, %c0_i32_0 : i32
    scf.if %2 {
      %cst_22 = arith.constant 0.000000e+00 : f32
      %33 = vector.broadcast %cst_22 : f32 to vector<4x1xf32>
      %c0_23 = arith.constant 0 : index
      %c0_24 = arith.constant 0 : index
      %34 = vector.load %arg5[%c0_23, %c0_24] : memref<4x1xf32, #tpu.memory_space<vmem>>, vector<4x1xf32>
      tpu.vector_store %arg5[%c0_23, %c0_24], %33 {strides = array<i32>} : memref<4x1xf32, #tpu.memory_space<vmem>>, vector<4x1xf32>,
      %cst_25 = arith.constant 0.000000e+00 : f32
      %35 = vector.broadcast %cst_25 : f32 to vector<4x1xf32>
      %c0_26 = arith.constant 0 : index
      %c0_27 = arith.constant 0 : index
      %36 = vector.load %arg6[%c0_26, %c0_27] : memref<4x1xf32, #tpu.memory_space<vmem>>, vector<4x1xf32>
      tpu.vector_store %arg6[%c0_26, %c0_27], %35 {strides = array<i32>} : memref<4x1xf32, #tpu.memory_space<vmem>>, vector<4x1xf32>,
      %cst_28 = arith.constant 0.000000e+00 : f32
      %37 = vector.broadcast %cst_28 : f32 to vector<4x1xf32>
      %c0_29 = arith.constant 0 : index
      %c0_30 = arith.constant 0 : index
      %38 = vector.load %arg7[%c0_29, %c0_30] : memref<4x1xf32, #tpu.memory_space<vmem>>, vector<4x1xf32>
      tpu.vector_store %arg7[%c0_29, %c0_30], %37 {strides = array<i32>} : memref<4x1xf32, #tpu.memory_space<vmem>>, vector<4x1xf32>,
    } else {
    }
    %c0 = arith.constant 0 : index
    %c0_1 = arith.constant 0 : index
    %c0_2 = arith.constant 0 : index
    %3 = vector.load %arg2[%c0, %c0_1, %c0_2] : memref<1x4x256xf32, #tpu.memory_space<vmem>>, vector<1x4x256xf32>
    %4 = vector.shape_cast %3 : vector<1x4x256xf32> to vector<4x256xf32>
    %c0_3 = arith.constant 0 : index
    %c0_4 = arith.constant 0 : index
    %c0_5 = arith.constant 0 : index
    %5 = vector.load %arg3[%c0_3, %c0_4, %c0_5] : memref<1x1x256xi32, #tpu.memory_space<vmem>>, vector<1x1x256xi32>
    %6 = vector.shape_cast %5 : vector<1x1x256xi32> to vector<1x256xi32>
    %7 = tpu.iota {dimensions = array<i32: 0>} : vector<4x1xi32>
    %8 = vector.broadcast %6 : vector<1x256xi32> to vector<4x256xi32>
    %9 = vector.broadcast %7 : vector<4x1xi32> to vector<4x256xi32>
    %10 = arith.cmpi eq, %8, %9 : vector<4x256xi32>
    %11 = arith.extui %10 : vector<4x256xi1> to vector<4x256xi32>
    %12 = arith.sitofp %11 : vector<4x256xi32> to vector<4x256xf32>
    %c0_6 = arith.constant 0 : index
    %c0_7 = arith.constant 0 : index
    %13 = vector.load %arg5[%c0_6, %c0_7] : memref<4x1xf32, #tpu.memory_space<vmem>>, vector<4x1xf32>
    %14 = arith.mulf %4, %12 : vector<4x256xf32>
    %cst = arith.constant dense<0.000000e+00> : vector<4xf32>
    %15 = vector.multi_reduction <add>, %14, %cst [1] : vector<4x256xf32> to vector<4xf32>
    %16 = vector.shape_cast %15 : vector<4xf32> to vector<4x1xf32>
    %17 = arith.addf %13, %16 : vector<4x1xf32>
    %c0_8 = arith.constant 0 : index
    %c0_9 = arith.constant 0 : index
    %18 = vector.load %arg5[%c0_8, %c0_9] : memref<4x1xf32, #tpu.memory_space<vmem>>, vector<4x1xf32>
    tpu.vector_store %arg5[%c0_8, %c0_9], %17 {strides = array<i32>} : memref<4x1xf32, #tpu.memory_space<vmem>>, vector<4x1xf32>,
    %c0_10 = arith.constant 0 : index
    %c0_11 = arith.constant 0 : index
    %19 = vector.load %arg6[%c0_10, %c0_11] : memref<4x1xf32, #tpu.memory_space<vmem>>, vector<4x1xf32>
    %cst_12 = arith.constant dense<0.000000e+00> : vector<4xf32>
    %20 = vector.multi_reduction <add>, %12, %cst_12 [1] : vector<4x256xf32> to vector<4xf32>
    %21 = vector.shape_cast %20 : vector<4xf32> to vector<4x1xf32>
    %22 = arith.addf %19, %21 : vector<4x1xf32>
    %c0_13 = arith.constant 0 : index
    %c0_14 = arith.constant 0 : index
    %23 = vector.load %arg6[%c0_13, %c0_14] : memref<4x1xf32, #tpu.memory_space<vmem>>, vector<4x1xf32>
    tpu.vector_store %arg6[%c0_13, %c0_14], %22 {strides = array<i32>} : memref<4x1xf32, #tpu.memory_space<vmem>>, vector<4x1xf32>,
    %c0_15 = arith.constant 0 : index
    %c0_16 = arith.constant 0 : index
    %24 = vector.load %arg7[%c0_15, %c0_16] : memref<4x1xf32, #tpu.memory_space<vmem>>, vector<4x1xf32>
    %25 = arith.mulf %4, %4 : vector<4x256xf32>
    %cst_17 = arith.constant dense<0.000000e+00> : vector<4xf32>
    %26 = vector.multi_reduction <add>, %25, %cst_17 [1] : vector<4x256xf32> to vector<4xf32>
    %27 = vector.shape_cast %26 : vector<4xf32> to vector<4x1xf32>
    %28 = arith.addf %24, %27 : vector<4x1xf32>
    %c0_18 = arith.constant 0 : index
    %c0_19 = arith.constant 0 : index
    %29 = vector.load %arg7[%c0_18, %c0_19] : memref<4x1xf32, #tpu.memory_space<vmem>>, vector<4x1xf32>
    tpu.vector_store %arg7[%c0_18, %c0_19], %28 {strides = array<i32>} : memref<4x1xf32, #tpu.memory_space<vmem>>, vector<4x1xf32>,
    %c0_i32_20 = arith.constant 0 : i32
    %30 = arith.cmpi eq, %arg1, %c0_i32_20 : i32
    %31 = arith.extui %30 : i1 to i32
    %c0_i32_21 = arith.constant 0 : i32
    %32 = arith.cmpi ne, %31, %c0_i32_21 : i32
    scf.if %32 {
      %c0_22 = arith.constant 0 : index
      %c0_23 = arith.constant 0 : index
      %33 = vector.load %arg5[%c0_22, %c0_23] : memref<4x1xf32, #tpu.memory_space<vmem>>, vector<4x1xf32>
      %34 = vector.shape_cast %33 : vector<4x1xf32> to vector<4x1xf32>
      %35 = vector.broadcast %34 : vector<4x1xf32> to vector<4x128xf32>
      %c0_24 = arith.constant 0 : index
      %c0_25 = arith.constant 0 : index
      %c0_26 = arith.constant 0 : index
      %36 = vector.load %arg4[%c0_24, %c0_25, %c0_26] : memref<1x4x384xf32, #tpu.memory_space<vmem>>, vector<1x4x128xf32>
      %37 = vector.shape_cast %36 : vector<1x4x128xf32> to vector<4x128xf32>
      %38 = vector.shape_cast %35 : vector<4x128xf32> to vector<1x4x128xf32>
      tpu.vector_store %arg4[%c0_24, %c0_25, %c0_26], %38 {strides = array<i32>} : memref<1x4x384xf32, #tpu.memory_space<vmem>>, vector<1x4x128xf32>,
      %c0_27 = arith.constant 0 : index
      %c0_28 = arith.constant 0 : index
      %39 = vector.load %arg6[%c0_27, %c0_28] : memref<4x1xf32, #tpu.memory_space<vmem>>, vector<4x1xf32>
      %40 = vector.shape_cast %39 : vector<4x1xf32> to vector<4x1xf32>
      %41 = vector.broadcast %40 : vector<4x1xf32> to vector<4x128xf32>
      %c0_29 = arith.constant 0 : index
      %c0_30 = arith.constant 0 : index
      %c128 = arith.constant 128 : index
      %42 = vector.load %arg4[%c0_29, %c0_30, %c128] : memref<1x4x384xf32, #tpu.memory_space<vmem>>, vector<1x4x128xf32>
      %43 = vector.shape_cast %42 : vector<1x4x128xf32> to vector<4x128xf32>
      %44 = vector.shape_cast %41 : vector<4x128xf32> to vector<1x4x128xf32>
      tpu.vector_store %arg4[%c0_29, %c0_30, %c128], %44 {strides = array<i32>} : memref<1x4x384xf32, #tpu.memory_space<vmem>>, vector<1x4x128xf32>,
      %c0_31 = arith.constant 0 : index
      %c0_32 = arith.constant 0 : index
      %45 = vector.load %arg7[%c0_31, %c0_32] : memref<4x1xf32, #tpu.memory_space<vmem>>, vector<4x1xf32>
      %46 = vector.shape_cast %45 : vector<4x1xf32> to vector<4x1xf32>
      %47 = vector.broadcast %46 : vector<4x1xf32> to vector<4x128xf32>
      %c0_33 = arith.constant 0 : index
      %c0_34 = arith.constant 0 : index
      %c256 = arith.constant 256 : index
      %48 = vector.load %arg4[%c0_33, %c0_34, %c256] : memref<1x4x384xf32, #tpu.memory_space<vmem>>, vector<1x4x128xf32>
      %49 = vector.shape_cast %48 : vector<1x4x128xf32> to vector<4x128xf32>
      %50 = vector.shape_cast %47 : vector<4x128xf32> to vector<1x4x128xf32>
      tpu.vector_store %arg4[%c0_33, %c0_34, %c256], %50 {strides = array<i32>} : memref<1x4x384xf32, #tpu.memory_space<vmem>>, vector<1x4x128xf32>,
    } else {
    }
    return
  }
  func.func @transform_0(%arg0: i32, %arg1: i32) -> (i32, i32, i32) {
    %c0_i32 = arith.constant 0 : i32
    %c0_i32_0 = arith.constant 0 : i32
    return %arg0, %c0_i32, %arg1 : i32, i32, i32
  }
  func.func @transform_1(%arg0: i32, %arg1: i32) -> (i32, i32, i32) {
    %c0_i32 = arith.constant 0 : i32
    %c0_i32_0 = arith.constant 0 : i32
    return %arg0, %c0_i32, %arg1 : i32, i32, i32
  }
  func.func @transform_2(%arg0: i32, %arg1: i32) -> (i32, i32, i32) {
    %c0_i32 = arith.constant 0 : i32
    %c0_i32_0 = arith.constant 0 : i32
    %c0_i32_1 = arith.constant 0 : i32
    return %arg0, %c0_i32, %c0_i32_0 : i32, i32, i32
  }
}

</mosaic_0001>

<bundles_post_ra>
// kernel: dice_loss.1
= control target key start
LH: loop header
LB: loop body
LE: loop exit
PB: predicated region body
PF: predicated region fallthrough
CT: control target
= control target key end

     0   :  { %s463_s9 = smov 0   ;;  %s465_s10 = smov 0   ;;  %s517_s0 = inlined_call_operand.vmem [shape: f32[2,4,256], index: 0, kind: input, shape index: {}]   ;;  %s518_s1 = inlined_call_operand.vmem [shape: s32[2,1,256], index: 1, kind: input, shape index: {}]   ;;  %s519_s2 = inlined_call_operand.vmem [shape: f32[2,4,384], index: 2, kind: output, shape index: {}]  }
   0x1   :  { %s467_s11 = smov 0  }
   0x2 LB: > { %s24_s12 = sadd.s32 1, %s440_s10  ;;  %p382_p0 = scmp.ge.s32.totalorder %s444_s11, 1  ;;  %s444_s11 = sphi %s467_s11, %s12_s11   ;;  %s440_s10 = sphi %s465_s10, %s521_s10   ;;  %s436_s9 = sphi %s463_s9, %s520_s9  }
   0x3   : > { %p26_p1 = scmp.ge.s32.totalorder %s24_s12, 2  ;;  %p147_p2 = scmp.lt.s32.totalorder %s444_s11, 3 }
   0x5   : > { %s523_s12 = smov (%p26_p1, %s24_s12), 0  ;;  %p148_p3 = pnand %p382_p0, %p147_p2 }
   0x6   : > { %p182_p4 = scmp.lt.s32.totalorder (!%p148_p3), %s436_s9, 1 }
   0x7   : > { %151 = sbr.rel (%p148_p3) target bundleno = 278 (0x116), region = 28 }
   0xc   : > { %v215_v0 = vlaneseq  ;;  %s525_s9 = smov (!%p182_p4, %s436_s9), 1  ;;  %vm209_vm0 = vcmask 3072   ;;  %v446_v1 = vmov 0.0   ;;  %vm229_vm3 = vcmask 1043456  }
   0xd   : > { %s385_s13 = sshll.u32 %s525_s9, 1  ;;  %210 = vst.msk [vmem:[#allocation2] sm:$0xf] %vm209_vm0, %v446_v1  ;;  %s391_s14 = sshll.u32 %s525_s9, 3  ;;  %v447_v26 = vmov 0  }
   0xe   : > { %s198_s17 = scalar_lea.vmem %s518_s1, %s385_s13  ;;  %v216_v2 = vshrl.u32 %v215_v0, 7  ;;  %211 = vst.msk [vmem:[#allocation3] sm:$0xf] %vm209_vm0, %v446_v1  ;;  %s189_s20 = scalar_lea.vmem %s517_s0, %s391_s14  ;;  %419 = vset.pattern.permute.xlu1 %v447_v26  ;;  %420 = vset.pattern.permute.xlu2 %v447_v26 }
   0xf   : > { %v214_v3 = vld [vmem:[%s198_s17] sm:$0x3]  ;;  %212 = vst.msk [vmem:[#allocation4] sm:$0xf] %vm209_vm0, %v446_v1  ;;  %421 = vset.pattern.permute.xlu0 %v447_v26  ;;  %s392_s21 = smul.u32 12, %s525_s9 }
  0x10   : > { %v217_v4 = vperm.slane %v214_v3, 0  ;;  %v218_v5 = vperm.slane %v214_v3, 1  ;;  %v213_v8 = vld [vmem:[%s189_s20] sm:$0xff] }
  0x11   : > { %v256_v12 = vmul.f32 %v213_v8, %v213_v8  ;;  %s204_s24 = scalar_lea.vmem %s519_s2, %s392_s21 }
  0x12   : > { %vm219_vm1 = vcmp.eq.s32.totalorder %v217_v4, %v216_v2  ;;  %vm220_vm2 = vcmp.eq.s32.totalorder %v218_v5, %v216_v2 }
  0x13   : > { %v387_v6 = vsel %vm219_vm1, 1.0, %v446_v1  ;;  %v388_v7 = vsel %vm220_vm2, 1.0, %v446_v1 }
  0x14   : > { %v228_v9 = vrot.slane %v388_v7, 4  ;;  %v248_v18 = vsel %vm229_vm3, %v387_v6, 0.0  ;;  %v249_v19 = vsel %vm229_vm3, %v388_v7, 0.0  ;;  %v225_v27 = vld [vmem:[#allocation2] sm:$0xf] }
  0x15   : > { %v250_v20 = vadd.f32 %v249_v19, %v248_v18  ;;  %v247_v30 = vld [vmem:[#allocation3] sm:$0xf] }
  0x16   : > { %v230_v10 = vsel %vm229_vm3, %v387_v6, %v228_v9  ;;  %v255_v31 = vld [vmem:[#allocation4] sm:$0xf] }
  0x17   : > { %v232_v11 = vmul.f32 %v230_v10, %v213_v8 }
  0x19   : > { %234 = vst [vmem:[#allocation1] ss:$2 sm:$0xff] %v232_v11 }
  0x20   : > { %v235_v13 = vld.sshfl [vmem:[#allocation1] sm:$0xff pattern:$0x75316420]  ;;  %v236_v14 = vld.sshfl [vmem:[#allocation1 + $0x8] sm:$0xff pattern:$0x75316420] }
  0x21   : > { %v239_v15 = vsel %vm229_vm3, %v235_v13, 0.0  ;;  %v240_v16 = vsel %vm229_vm3, %v236_v14, 0.0  ;;  %258 = vst [vmem:[#allocation1] ss:$2 sm:$0xff] %v256_v12 }
  0x22   : > { %v241_v17 = vadd.f32 %v240_v16, %v239_v15 }
  0x24   : > { %242 = vadd.xlane.f32.xlu0 %v241_v17 }
  0x28   : > { %v259_v21 = vld.sshfl [vmem:[#allocation1] sm:$0xff pattern:$0x75316420]  ;;  %v260_v22 = vld.sshfl [vmem:[#allocation1 + $0x8] sm:$0xff pattern:$0x75316420] }
  0x29   : > { %v263_v23 = vsel %vm229_vm3, %v259_v21, 0.0  ;;  %v264_v24 = vsel %vm229_vm3, %v260_v22, 0.0 }
  0x2a   : > { %v265_v25 = vadd.f32 %v264_v24, %v263_v23 }
  0x2c   : > { %251 = vadd.xlane.f32.xlu0 %v250_v20  ;;  %266 = vadd.xlane.f32.xlu1 %v265_v25 }
  0x97   : > { %v243_v28 = vpop.xlane.xlu0 %242 }
  0x98   : > { %v244_v29 = vadd.f32 %v243_v28, %v225_v27 }
  0x9a   : > { %246 = vst.msk [vmem:[#allocation2] sm:$0xf] %vm209_vm0, %v244_v29 }
  0x9f   : > { %v252_v32 = vpop.xlane.xlu0 %251  ;;  %v267_v33 = vpop.xlane.xlu1 %266 }
  0xa0   : > { %v253_v34 = vadd.f32 %v252_v32, %v247_v30  ;;  %v268_v35 = vadd.f32 %v267_v33, %v255_v31 }
  0xa1   : > { %v273_v36 = vld [vmem:[#allocation2] sm:$0xf] }
  0xa2   : > { %254 = vst.msk [vmem:[#allocation3] sm:$0xf] %vm209_vm0, %v253_v34  ;;  %276 = vperm.xlu1 %419, %v273_v36  }
  0xa3   : > { %269 = vst.msk [vmem:[#allocation4] sm:$0xf] %vm209_vm0, %v268_v35 }
  0xa9   : > { %v280_v37 = vld [vmem:[#allocation3] sm:$0xf] }
  0xaa   : > { %283 = vperm.xlu2 %420, %v280_v37   ;;  %v287_v38 = vld [vmem:[#allocation4] sm:$0xf] }
  0xb2   : > { %290 = vperm.xlu2 %420, %v287_v38  }
 0x104   : > { %v284_v39 = vpop.permute.xlu2 %283 }
 0x105   : > { %286 = vst [vmem:[%s204_s24 + $0x4] sm:$0xf] %v284_v39 }
 0x10c   : > { %v291_v40 = vpop.permute.xlu2 %290 }
 0x10d   : > { %293 = vst [vmem:[%s204_s24 + $0x8] sm:$0xf] %v291_v40 }
 0x114   : > { %v277_v41 = vpop.permute.xlu1 %276 }
 0x115   : > { %279 = vst [vmem:[%s204_s24] sm:$0xf] %v277_v41 }
 0x116 PF: > { %s12_s11 = sadd.s32 1, %s444_s11   ;;  %s520_s9 = smov %s440_s10 }
 0x117   : > { %p9_p5 = scmp.ge.s32.totalorder %s12_s11, 4   ;;  %s521_s10 = smov %s523_s12 }
 0x119   :  { %11 = sbr.rel (!%p9_p5) target bundleno = 2 (0x2), region = 69 }

</bundles_post_ra>
